<compile_context>
chip_gen: v6e
topology: v6e:2x2x1
jax: 0.10.0
libtpu: 0.0.40
codegen_flags: <defaults>
</compile_context>

<pallas_src>
import functools

import jax
import jax.numpy as jnp
from jax.experimental import pallas as pl
from jax.experimental.pallas import tpu as pltpu

EPS = 1e-6


# --------------------------------------------------------------------------
# small helpers
# --------------------------------------------------------------------------
def _round_up(n: int, m: int) -> int:
    return ((n + m - 1) // m) * m


def _device_kind() -> str:
    try:
        return jax.devices()[0].device_kind.lower()
    except Exception:
        return ""


def _tensorcores_per_chip() -> int:
    kind = _device_kind()
    return 2 if any(t in kind for t in ("v7", "tpu7", "7x")) else 1


def _bf16_valu_ok() -> bool:
    # v6e / v7x have bf16-native VALU + MXU; v5e does not.
    kind = _device_kind()
    return any(t in kind for t in ("v6", "tpu6", "v7", "tpu7", "7x"))


def _int_pow(x, n: int):
    """x ** n for a static positive integer n, as a VALU multiply chain."""
    assert n >= 1
    result = None
    base = x
    while n:
        if n & 1:
            result = base if result is None else result * base
        n >>= 1
        if n:
            base = base * base
    return result


def _resolve_static_p(p):
    """Return a Python float if p is statically known at trace time, else None.

    Pass `p` as a Python number (or close over it / mark it static under jit)
    to guarantee the static path; a traced array always returns None here.
    """
    if isinstance(p, (int, float)):
        return float(p)
    try:
        return float(jnp.asarray(p).reshape(-1)[0])   # raises for tracers
    except Exception:
        return None


# --------------------------------------------------------------------------
# kernel
# --------------------------------------------------------------------------
def gem_pool_kernel(p_ref, den_ref, x_ref, m_ref, o_ref, num_ref, *,
                    static_p, use_chain, compute_dtype):
    # p_ref  : SMEM (1,) f32     - exponent (only read on the runtime path)
    # den_ref: SMEM (B,) f32     - precomputed clip(mask.sum(1), eps)
    # x_ref  : VMEM (1, tS, tH)  - activation tile
    # m_ref  : VMEM (1, 1, tS)   - lane-dense mask tile
    # o_ref  : VMEM (1, 1, tH)   - pooled output tile (resident across S)
    # num_ref: VMEM (1, tH) f32  - running sum_s (clip(x)*m)^p
    b = pl.program_id(0)
    s = pl.program_id(2)

    @pl.when(s == 0)
    def _init():
        num_ref[...] = jnp.zeros_like(num_ref)

    # Static integer p -> multiply chain can run in the (possibly bf16)
    # compute dtype; generic p -> exp/log on the EUP, done in f32.
    ew_dtype = compute_dtype if use_chain else jnp.float32
    x = x_ref[0].astype(ew_dtype)                       # (tS, tH)
    m = m_ref[0].astype(ew_dtype)                       # (1, tS)
    xc = jnp.maximum(x, jnp.asarray(EPS, ew_dtype))

    if use_chain:
        n = int(static_p)
        xp = _int_pow(xc, n)                            # VALU multiply chain
        mp = _int_pow(m, n)
    else:
        p = jnp.float32(static_p) if static_p is not None else p_ref[0]
        xp = jnp.exp(p * jnp.log(xc)).astype(compute_dtype)    # xc >= eps > 0
        pos = m > 0
        # Guarded so m == 0 gives exactly 0 (never exp(p*log(0)) -> -inf path).
        mp = jnp.where(pos, jnp.exp(p * jnp.log(jnp.where(pos, m, 1.0))), 0.0)
        mp = mp.astype(compute_dtype)

    # (clip(x)*m)^p = m^p * clip(x)^p for mask >= 0, so mask-apply + the
    # S-reduction is a single (1,tS)x(tS,tH) MXU matmul.
    num_ref[...] += jnp.dot(mp, xp, preferred_element_type=jnp.float32)

    @pl.when(s == pl.num_programs(2) - 1)
    def _finalize():
        den = den_ref[b]                                # scalar f32, >= EPS
        ratio = num_ref[...] / den                      # (1, tH) f32, >= 0
        if static_p is not None:
            inv_p = jnp.float32(1.0 / float(static_p))
        else:
            inv_p = 1.0 / p_ref[0]
        pos = ratio > 0.0
        # ratio == 0 (fully masked row) must give 0, not NaN.
        res = jnp.where(pos, jnp.exp(inv_p * jnp.log(jnp.where(pos, ratio, 1.0))), 0.0)
        o_ref[0] = res.astype(o_ref.dtype)


# --------------------------------------------------------------------------
# wrapper
# --------------------------------------------------------------------------
def my_awesome_pooler(x, mask, p=3.0, *, max_ts=None, max_th=None,
                      compute_dtype=None):
    """GeM masked pooling.  x: (B, S, H), mask: (B, S)  ->  (B, H).

    Pass `p` as a Python number (e.g. the module's init value 3) to get the
    static multiply-chain path (works under jax.jit when `p` is closed over
    or marked static).  Passing a (1,) jax array (learnable parameter) uses
    the runtime exp/log path.
    """
    B, S, H = x.shape
    static_p = _resolve_static_p(p)
    use_chain = (static_p is not None and float(static_p) == int(static_p)
                 and 1 <= int(static_p) <= 16)

    # --- compute dtype ----------------------------------------------------
    if compute_dtype is None:
        compute_dtype = (jnp.bfloat16
                         if (x.dtype == jnp.bfloat16 and _bf16_valu_ok())
                         else jnp.float32)
    compute_dtype = jnp.dtype(compute_dtype)

    # --- tile selection (128-aligned; wrapper pads) -------------------------
    two_cores = _tensorcores_per_chip() >= 2
    if max_ts is None:
        # Bigger per-step tile on v7x (3.2 TB/s makes the ~0.35us fixed
        # per-grid-step overhead relatively expensive); keep f32 tiles at
        # 4 MiB so VMEM stays comfortable on every chip.
        max_ts = 2048 if (two_cores and jnp.dtype(x.dtype).itemsize <= 2) else 1024
    if max_th is None:
        max_th = 1024
    cap_s = max(128, (int(max_ts) // 128) * 128)
    cap_h = max(128, (int(max_th) // 128) * 128)
    tS = min(_round_up(S, 128), cap_s)
    tH = min(_round_up(H, 128), cap_h)

    # v7x: guarantee >= 2 parallel grid slices so both TensorCores get work.
    if two_cores and B == 1 and _round_up(H, tH) // tH < 2:
        k = _round_up(H, 128) // 128
        if k >= 2:
            tH = 128 * ((k + 1) // 2)

    S_pad = _round_up(S, tS)
    H_pad = _round_up(H, tH)
    nS = S_pad // tS
    nH = H_pad // tH

    # --- wrapper-side prep ---------------------------------------------------
    mask_f = mask.astype(jnp.float32)
    # Denominator depends only on (b); hoist it out of the kernel entirely.
    den = jnp.maximum(jnp.sum(mask_f, axis=1), EPS)            # (B,) f32
    if S_pad != S or H_pad != H:
        # Padded tokens get mask 0 -> contribute nothing to num or den;
        # padded H columns are sliced off the output below.
        x = jnp.pad(x, ((0, 0), (0, S_pad - S), (0, H_pad - H)))
    if S_pad != S:
        mask_f = jnp.pad(mask_f, ((0, 0), (0, S_pad - S)))
    m3 = mask_f.reshape(B, 1, S_pad)                           # lane-dense mask

    if static_p is not None:
        p_arr = jnp.full((1,), float(static_p), jnp.float32)
    else:
        p_arr = jnp.asarray(p, jnp.float32).reshape(1)

    kernel = functools.partial(gem_pool_kernel, static_p=static_p,
                               use_chain=use_chain, compute_dtype=compute_dtype)

    # --- VMEM budget: above the default scoped limit, below v7x physical ----
    x_isz = jnp.dtype(x.dtype).itemsize
    c_isz = compute_dtype.itemsize
    tile = tS * tH
    need = 2 * tile * x_isz + 4 * tile * c_isz + (2 << 20)
    vmem_limit = int(min(max(32 << 20, 2 * need), 56 << 20))

    cost = pl.CostEstimate(
        flops=4 * B * S_pad * H_pad,
        transcendentals=(0 if use_chain else 2 * B * S_pad * H_pad) + 2 * B * H_pad,
        bytes_accessed=B * S_pad * H_pad * x_isz + B * S_pad * 4 + B * H_pad * x_isz,
    )

    out = pl.pallas_call(
        kernel,
        out_shape=jax.ShapeDtypeStruct((B, 1, H_pad), x.dtype),
        grid_spec=pltpu.PrefetchScalarGridSpec(
            num_scalar_prefetch=0,
            grid=(B, nH, nS),                                          # S innermost
            in_specs=[
                pl.BlockSpec(memory_space=pltpu.SMEM),                 # p   (1,)
                pl.BlockSpec(memory_space=pltpu.SMEM),                 # den (B,)
                pl.BlockSpec((1, tS, tH), lambda b, j, s: (b, s, j)),  # x
                pl.BlockSpec((1, 1, tS), lambda b, j, s: (b, 0, s)),   # mask
            ],
            out_specs=pl.BlockSpec((1, 1, tH), lambda b, j, s: (b, 0, j)),
            scratch_shapes=[pltpu.VMEM((1, tH), jnp.float32)],         # num acc
        ),
        compiler_params=pltpu.CompilerParams(
            dimension_semantics=("parallel", "parallel", "arbitrary"),
            vmem_limit_bytes=vmem_limit),
        cost_estimate=cost,
    )(p_arr, den, x, m3)
    return out.reshape(B, H_pad)[:, :H]


# --------------------------------------------------------------------------
# plain-JAX reference (replicates the PyTorch forward) and tests
# --------------------------------------------------------------------------
def reference(x, mask, p):
    p = float(p) if isinstance(p, (int, float)) else float(jnp.asarray(p).reshape(-1)[0])
    m = jnp.broadcast_to(mask[..., None].astype(x.dtype), x.shape)
    num = jnp.sum((jnp.clip(x, EPS) * m) ** p, axis=1)
    den = jnp.clip(jnp.sum(m, axis=1), EPS)
    return (num / den) ** (1.0 / p)


if __name__ == "__main__":
    key = jax.random.PRNGKey(0)
    kx, km = jax.random.split(key)

    B, S, H = 2, 256, 256
    x = jax.random.uniform(kx, (B, S, H), dtype=jnp.float32) + 0.1
    mask = (jax.random.uniform(km, (B, S)) > 0.3).astype(jnp.float32)
    mask = mask.at[:, 0].set(1.0)   # at least one valid token per row

    # 1) static p = 3 (module init value); small tiles exercise the
    #    multi-step S/H accumulation path.
    out = jax.block_until_ready(my_awesome_pooler(x, mask, 3.0, max_ts=128, max_th=128))
    ref = reference(x, mask, 3.0)
    assert out.shape == (B, H), out.shape
    assert jnp.allclose(out, ref, rtol=2e-3, atol=1e-4)

    # 2) runtime (learnable) p = 2.5 array -> EUP path; row 1 fully masked
    #    out must give exact zeros (no NaN from exp/log of 0).
    mask2 = mask.at[1, :].set(0.0)
    p2 = jnp.ones((1,), dtype=jnp.float32) * 2.5
    out2 = jax.block_until_ready(my_awesome_pooler(x, mask2, p2, max_ts=128, max_th=128))
    ref2 = reference(x, mask2, 2.5)
    assert jnp.all(jnp.isfinite(out2))
    assert jnp.allclose(out2, ref2, rtol=2e-3, atol=1e-4)
    assert jnp.allclose(out2[1], 0.0, atol=1e-6)

    # 3) non-128-aligned S/H -> wrapper padding path, default tile caps.
    S3, H3 = 200, 200
    x3 = jax.random.uniform(jax.random.PRNGKey(1), (B, S3, H3), dtype=jnp.float32) + 0.1
    m3 = (jax.random.uniform(jax.random.PRNGKey(2), (B, S3)) > 0.3).astype(jnp.float32)
    m3 = m3.at[:, 0].set(1.0)
    out3 = jax.block_until_ready(my_awesome_pooler(x3, m3, 3.0))
    ref3 = reference(x3, m3, 3.0)
    assert out3.shape == (B, H3)
    assert jnp.allclose(out3, ref3, rtol=2e-3, atol=1e-4)

    # 4) bf16 activations (kept in bf16 on v6e/v7x, upcast to f32 elsewhere).
    xb = x.astype(jnp.bfloat16)
    outb = jax.block_until_ready(my_awesome_pooler(xb, mask, 3.0, max_ts=128, max_th=128))
    refb = reference(xb.astype(jnp.float32), mask, 3.0)
    assert jnp.allclose(outb.astype(jnp.float32), refb, rtol=2e-2, atol=1e-3)

    # 5) static-p path fires under jit (p closed over as a Python constant).
    pooler_jit = jax.jit(functools.partial(my_awesome_pooler, p=3.0,
                                           max_ts=128, max_th=128))
    out5 = jax.block_until_ready(pooler_jit(x, mask))
    assert jnp.allclose(out5, ref, rtol=2e-3, atol=1e-4)

    print("KERNEL_OK")
</pallas_src>

<mosaic_0001>
module attributes {stable_mosaic.version = 11 : i64} {
  func.func @gem_pool_kernel(%arg0: i32, %arg1: i32, %arg2: i32, %arg3: memref<1xf32, #tpu.memory_space<smem>>, %arg4: memref<2xf32, #tpu.memory_space<smem>>, %arg5: memref<1x128x128xf32, #tpu.memory_space<vmem>>, %arg6: memref<1x1x128xf32, #tpu.memory_space<vmem>>, %arg7: memref<1x1x128xf32, #tpu.memory_space<vmem>>, %arg8: memref<1x128xf32, #tpu.memory_space<vmem>>) attributes {dimension_semantics = [#tpu.dimension_semantics<parallel>, #tpu.dimension_semantics<parallel>, #tpu.dimension_semantics<arbitrary>], iteration_bounds = array<i64: 2, 2, 2>, scalar_prefetch = 0 : i64, scratch_operands = 1 : i64, tpu.core_type = #tpu.core_type<tc>, window_params = [{transform_indices = @transform_0, window_bounds = array<i64: 1>}, {transform_indices = @transform_1, window_bounds = array<i64: 2>}, {transform_indices = @transform_2, window_bounds = array<i64: 1, 128, 128>}, {transform_indices = @transform_3, window_bounds = array<i64: 1, 1, 128>}, {transform_indices = @transform_4, window_bounds = array<i64: 1, 1, 128>}]} {
    %c0_i32 = arith.constant 0 : i32
    %0 = arith.cmpi eq, %arg2, %c0_i32 : i32
    %1 = arith.extui %0 : i1 to i32
    %c0_i32_0 = arith.constant 0 : i32
    %2 = arith.cmpi ne, %1, %c0_i32_0 : i32
    scf.if %2 {
      %cst_12 = arith.constant 0.000000e+00 : f32
      %20 = vector.broadcast %cst_12 : f32 to vector<1x128xf32>
      %c0_13 = arith.constant 0 : index
      %c0_14 = arith.constant 0 : index
      %21 = vector.load %arg8[%c0_13, %c0_14] : memref<1x128xf32, #tpu.memory_space<vmem>>, vector<1x128xf32>
      tpu.vector_store %arg8[%c0_13, %c0_14], %20 {strides = array<i32>} : memref<1x128xf32, #tpu.memory_space<vmem>>, vector<1x128xf32>,
    } else {
    }
    %c0 = arith.constant 0 : index
    %c0_1 = arith.constant 0 : index
    %c0_2 = arith.constant 0 : index
    %3 = vector.load %arg5[%c0, %c0_1, %c0_2] : memref<1x128x128xf32, #tpu.memory_space<vmem>>, vector<1x128x128xf32>
    %4 = vector.shape_cast %3 : vector<1x128x128xf32> to vector<128x128xf32>
    %c0_3 = arith.constant 0 : index
    %c0_4 = arith.constant 0 : index
    %c0_5 = arith.constant 0 : index
    %5 = vector.load %arg6[%c0_3, %c0_4, %c0_5] : memref<1x1x128xf32, #tpu.memory_space<vmem>>, vector<1x1x128xf32>
    %6 = vector.shape_cast %5 : vector<1x1x128xf32> to vector<1x128xf32>
    %cst = arith.constant 9.99999997E-7 : f32
    %7 = vector.broadcast %cst : f32 to vector<128x128xf32>
    %8 = arith.maximumf %4, %7 : vector<128x128xf32>
    %9 = arith.mulf %8, %8 : vector<128x128xf32>
    %10 = arith.mulf %8, %9 : vector<128x128xf32>
    %11 = arith.mulf %6, %6 : vector<1x128xf32>
    %12 = arith.mulf %6, %11 : vector<1x128xf32>
    %c0_6 = arith.constant 0 : index
    %c0_7 = arith.constant 0 : index
    %13 = vector.load %arg8[%c0_6, %c0_7] : memref<1x128xf32, #tpu.memory_space<vmem>>, vector<1x128xf32>
    %cst_8 = arith.constant dense<0.000000e+00> : vector<1x128xf32>
    %14 = tpu.matmul %12, %10, %cst_8 {dimension_numbers = #tpu.dot_dimension_numbers<[1], [0], [0], [1], [0, 0, 1, 1], [], []>} : vector<1x128xf32>, vector<128x128xf32>, vector<1x128xf32> -> vector<1x128xf32>
    %15 = arith.addf %13, %14 : vector<1x128xf32>
    %c0_9 = arith.constant 0 : index
    %c0_10 = arith.constant 0 : index
    %16 = vector.load %arg8[%c0_9, %c0_10] : memref<1x128xf32, #tpu.memory_space<vmem>>, vector<1x128xf32>
    tpu.vector_store %arg8[%c0_9, %c0_10], %15 {strides = array<i32>} : memref<1x128xf32, #tpu.memory_space<vmem>>, vector<1x128xf32>,
    %c1_i32 = arith.constant 1 : i32
    %17 = arith.cmpi eq, %arg2, %c1_i32 : i32
    %18 = arith.extui %17 : i1 to i32
    %c0_i32_11 = arith.constant 0 : i32
    %19 = arith.cmpi ne, %18, %c0_i32_11 : i32
    scf.if %19 {
      %20 = arith.index_cast %arg0 : i32 to index
      %21 = memref.load %arg4[%20] : memref<2xf32, #tpu.memory_space<smem>>
      %c0_12 = arith.constant 0 : index
      %c0_13 = arith.constant 0 : index
      %22 = vector.load %arg8[%c0_12, %c0_13] : memref<1x128xf32, #tpu.memory_space<vmem>>, vector<1x128xf32>
      %23 = vector.broadcast %21 : f32 to vector<1x128xf32>
      %24 = arith.divf %22, %23 : vector<1x128xf32>
      %cst_14 = arith.constant 0.000000e+00 : f32
      %25 = vector.broadcast %cst_14 : f32 to vector<1x128xf32>
      %26 = arith.cmpf ogt, %24, %25 : vector<1x128xf32>
      %cst_15 = arith.constant 1.000000e+00 : f32
      %27 = vector.broadcast %cst_15 : f32 to vector<1x128xf32>
      %28 = arith.select %26, %24, %27 : vector<1x128xi1>, vector<1x128xf32>
      %29 = math.log %28 : vector<1x128xf32>
      %cst_16 = arith.constant 0.333333343 : f32
      %30 = vector.broadcast %cst_16 : f32 to vector<1x128xf32>
      %31 = arith.mulf %30, %29 : vector<1x128xf32>
      %32 = math.exp %31 : vector<1x128xf32>
      %cst_17 = arith.constant 0.000000e+00 : f32
      %33 = vector.broadcast %cst_17 : f32 to vector<1x128xf32>
      %34 = arith.select %26, %32, %33 : vector<1x128xi1>, vector<1x128xf32>
      %c0_18 = arith.constant 0 : index
      %c0_19 = arith.constant 0 : index
      %c0_20 = arith.constant 0 : index
      %35 = vector.load %arg7[%c0_18, %c0_19, %c0_20] : memref<1x1x128xf32, #tpu.memory_space<vmem>>, vector<1x1x128xf32>
      %36 = vector.shape_cast %35 : vector<1x1x128xf32> to vector<1x128xf32>
      %37 = vector.shape_cast %34 : vector<1x128xf32> to vector<1x1x128xf32>
      tpu.vector_store %arg7[%c0_18, %c0_19, %c0_20], %37 {strides = array<i32>} : memref<1x1x128xf32, #tpu.memory_space<vmem>>, vector<1x1x128xf32>,
    } else {
    }
    return
  }
  func.func @transform_0(%arg0: i32, %arg1: i32, %arg2: i32) -> i32 {
    %c0_i32 = arith.constant 0 : i32
    %c0_i32_0 = arith.constant 0 : i32
    return %c0_i32 : i32
  }
  func.func @transform_1(%arg0: i32, %arg1: i32, %arg2: i32) -> i32 {
    %c0_i32 = arith.constant 0 : i32
    %c0_i32_0 = arith.constant 0 : i32
    return %c0_i32 : i32
  }
  func.func @transform_2(%arg0: i32, %arg1: i32, %arg2: i32) -> (i32, i32, i32) {
    %c0_i32 = arith.constant 0 : i32
    return %arg0, %arg2, %arg1 : i32, i32, i32
  }
  func.func @transform_3(%arg0: i32, %arg1: i32, %arg2: i32) -> (i32, i32, i32) {
    %c0_i32 = arith.constant 0 : i32
    %c0_i32_0 = arith.constant 0 : i32
    return %arg0, %c0_i32, %arg2 : i32, i32, i32
  }
  func.func @transform_4(%arg0: i32, %arg1: i32, %arg2: i32) -> (i32, i32, i32) {
    %c0_i32 = arith.constant 0 : i32
    %c0_i32_0 = arith.constant 0 : i32
    return %arg0, %c0_i32, %arg1 : i32, i32, i32
  }
}

</mosaic_0001>

<bundles_post_ra>
// kernel: tpu_custom_call.1
= control target key start
LH: loop header
LB: loop body
LE: loop exit
PB: predicated region body
PF: predicated region fallthrough
CT: control target
= control target key end

     0   :  { %s1318_s0 = inlined_call_operand.<no memory space> [shape: f32[1], index: 0, kind: input, shape index: {}]   ;;  %s1319_s1 = inlined_call_operand.vmem [shape: f32[2], index: 1, kind: input, shape index: {}]   ;;  %s1320_s2 = inlined_call_operand.hbm [shape: f32[2,256,256], index: 2, kind: input, shape index: {}]   ;;  %s1321_s3 = inlined_call_operand.vmem [shape: f32[2,1,256], index: 3, kind: input, shape index: {}]   ;;  %s1322_s4 = inlined_call_operand.hbm [shape: f32[2,1,256], index: 4, kind: output, shape index: {}]  }
   0x1   :  { %1337 = sst [smem:[#allocation21_spill]] %s1319_s1 }
   0x2   :  { %1338 = sst [smem:[#allocation22_spill]] %s1322_s4 }
   0x3   :  { %10 = vsyncpa [#allocation7], 0 }
   0x4   :  { %11 = vsyncpa [#allocation5], 0 }
   0x5   :  { %13 = vsyncpa [#allocation5 + $0x1], 0 }
   0x6   :  { %14 = vsyncpa [#allocation6], 0 }
   0x7   :  { %16 = vsyncpa [#allocation6 + $0x1], 0  ;;  %s1015_s15 = smov 0   ;;  %s1017_s0 = smov 0  }
   0x8   :  { %s1019_s16 = smov 0   ;;  %s1021_s17 = smov 0  }
   0x9   :  { %s1023_s18 = smov 0   ;;  %s1025_s19 = smov 0  }
   0xa   :  { %s1027_s20 = smov 0   ;;  %s1029_s21 = smov 0  }
   0xb   :  { %s1031_s22 = smov 0   ;;  %s1033_s23 = smov 0  }
   0xc   :  { %s1035_s24 = smov 0   ;;  %s1037_s25 = smov 0  }
   0xd   :  { %s1039_s26 = smov 0  }
   0xe LB: > { %1339 = sst [smem:[#allocation13_spill]] %s931_s15  ;;  %s582_s27 = sadd.s32 4294967295, %s979_s26   ;;  %s979_s26 = sphi %s1039_s26, %s22_s26   ;;  %s975_s25 = sphi %s1037_s25, %s1378_s25   ;;  %s971_s24 = sphi %s1035_s24, %s1370_s24   ;;  %s967_s23 = sphi %s1033_s23, %s1369_s23   ;;  %s963_s22 = sphi %s1031_s22, %s1377_s22   ;;  %s959_s21 = sphi %s1029_s21, %s1368_s21   ;;  %s955_s20 = sphi %s1027_s20, %s1367_s20   ;;  %s951_s19 = sphi %s1025_s19, %s1376_s19   ;;  %s947_s18 = sphi %s1023_s18, %s1375_s18   ;;  %s943_s17 = sphi %s1021_s17, %s1374_s17   ;;  %s939_s16 = sphi %s1019_s16, %s1373_s16   ;;  %s935_s0 = sphi %s1017_s0, %s1372_s0   ;;  %s931_s15 = sphi %s1015_s15, %s1371_s15  }
   0xf   : > { %1340 = sst [smem:[#allocation14_spill]] %s967_s23  ;;  %s583_s28 = sadd.s32 4294967294, %s979_s26  }
  0x10   : > { %1341 = sst [smem:[#allocation15_spill]] %s971_s24  ;;  %p101_p0 = scmp.ne.s32.totalorder %s951_s19, %s947_s18 }
  0x11   : > { %1342 = sst [smem:[#allocation16_spill]] %s979_s26  ;;  %p102_p1 = scmp.eq.s32.totalorder %s979_s26, 0 }
  0x12   : > { %p107_p2 = scmp.ne.s32.totalorder %s947_s18, %s943_s17  ;;  %p1085_p3 = scmp.eq.s32.totalorder %s582_s27, 0 }
  0x13   : > { %p1090_p4 = por %p102_p1, %p101_p0  ;;  %p160_p5 = scmp.ne.s32.totalorder %s939_s16, %s935_s0 }
  0x14   : > { %p1098_p6 = por %p1085_p3, %p107_p2  ;;  %p161_p7 = scmp.eq.s32.totalorder %s582_s27, 7 }
  0x15   : > { %p166_p8 = scmp.ne.s32.totalorder %s935_s0, %s931_s15  ;;  %p167_p9 = scmp.eq.s32.totalorder %s583_s28, 7 }
  0x16   : > { %s1345_s7 = scalar_select %p1098_p6, 1, 0 }
  0x17   : > { %p1104_p10 = por %p161_p7, %p160_p5  ;;  %p584_p11 = scmp.ge.s32.totalorder %s979_s26, 1 }
  0x18   : > { %p1109_p12 = por %p167_p9, %p166_p8  ;;  %p174_p13 = scmp.lt.s32.totalorder %s979_s26, 9 }
  0x19   : > { %s1346_s8 = scalar_select %p1104_p10, 1, 0 }
  0x1a   : > { %s1348_s9 = scalar_select %p1109_p12, 1, 0 }
  0x1b   : > { %1347 = sst [smem:[#allocation17_spill]] %s1346_s8  ;;  %p1117_p0 = pnand %p584_p11, %p174_p13 }
  0x1c   : > { %1349 = sst [smem:[#allocation18_spill]] %s1348_s9  ;;  %p676_p2 = scmp.lt.s32.totalorder %s979_s26, 8 }
  0x1d   : > { %s1350_s1 = sld [smem:[#allocation21_spill]]  ;;  %p663_p1 = pneg %p1117_p0 }
  0x1e   : > { %s1351_s13 = scalar_select %p1117_p0, 1, 0 }
  0x1f   : > { %p664_p5 = pnand %p663_p1, %p1085_p3  ;;  %p1128_p7 = pnand %p676_p2, %p1090_p4 }
  0x21   : > { %p798_p9 = pneg %p664_p5 }
  0x23   : > { %s190_s12 = sshll.u32 %s1350_s1, 4  ;;  %s191_s12 = int_to_ptr.vmem [resolvable:$true] %s190_s12 }
  0x24   : > { %s796_s17 = scalar_lea.vmem %s191_s12, 16  ;;  %p804_p13 = scmp.lt.s32.totalorder %s191_s12, %s191_s12 }
  0x25   : > { %p797_p8 = scmp.ne.s32.totalorder %s191_s12, %s796_s17  ;;  %p805_p10 = scmp.lt.s32.totalorder %s796_s17, %s796_s17 }
  0x27   : > { %p799_p12 = pnand %p798_p9, %p797_p8  ;;  %p806_p6 = por %p805_p10, %p804_p13 }
  0x29   : > { %p800_p11 = pneg %p799_p12 }
  0x2b   : > { %p807_p0 = pnand %p806_p6, %p800_p11 }
  0x2d   : > { %810 = shalt.err (!%p807_p0)
}
  0x2e   : > { %s981_s27 = smov [#allocation4]   ;;  %s34_s28 = sadd.s32 1, %s967_s23 }
  0x2f   : > { %666 = dma.vmem_to_smem (!%p664_p5), %s191_s12, 16, %s981_s27, [#allocation7]  }
  0x30   : > { %s37_s6 = sadd.s32 1, %s971_s24  ;;  %p35_p4 = scmp.ge.s32.totalorder %s34_s28, 2 }
  0x31   : > { %s41_s10 = sadd.s32 1, %s975_s25  ;;  %s201_s11 = sand.u32 1, %s951_s19  }
  0x32   : > { %s602_s17 = sshll.u32 %s967_s23, 5  ;;  %s1380_s28 = smov (%p35_p4, %s34_s28), 0 }
  0x33   : > { %1353 = sst [smem:[#allocation19_spill]] %s1380_s28  ;;  %s1382_s6 = smov (!%p35_p4, %s37_s6), %s971_s24 }
  0x34   : > { %s88_s29 = ssub.s32 %s967_s23, %s1380_s28  ;;  %p39_p6 = scmp.ge.s32.totalorder %s1382_s6, 2 }
  0x35   : > { %s587_s5 = sshll.u32 %s201_s11, 7  ;;  %s211_s1 = sadd.s32 %s971_s24, %s602_s17 }
  0x36   : > { %s1384_s6 = smov (%p39_p6, %s1382_s6), 0  ;;  %s1386_s10 = smov (!%p39_p6, %s41_s10), %s975_s25 }
  0x37   : > { %1354 = sst [smem:[#allocation20_spill]] %s1384_s6  ;;  %s90_s12 = ssub.s32 %s971_s24, %s1384_s6 }
  0x38   : > { %s590_s27 = sshll.u32 %s975_s25, 6  ;;  %p43_p10 = scmp.ge.s32.totalorder %s1386_s10, 2 }
  0x39   : > { %s213_s9 = sadd.s32 %s590_s27, %s211_s1  ;;  %s205_s26 = scalar_lea.vmem [#allocation8], %s587_s5 }
  0x3a   : > { %s591_s15 = sshll.u32 %s213_s9, 7  ;;  %s216_s28 = sshll.u32 %s205_s26, 4  ;;  %s1156_s28 = int_to_ptr.vmem [resolvable:$true] %s216_s28 }
  0x3b   : > { %s1388_s10 = smov (%p43_p10, %s1386_s10), 0  ;;  %s1154_s4 = scalar_lea.hbm %s1320_s2, %s591_s15 }
  0x3c   : > { %s87_s6 = ssub.s32 %s975_s25, %s1388_s10  ;;  %s1355_s26 = sadd.s32 1, %s939_s16 }
  0x3d   : > { %s89_s24 = sor.u32 %s88_s29, %s87_s6  ;;  %s147_s8 = sor.u32 %s90_s12, %s87_s6 }
  0x3e   : > { %s91_s1 = sor.u32 %s90_s12, %s89_s24  ;;  %p148_p12 = scmp.eq.s32.totalorder %s147_s8, 0 }
  0x3f   : > { %p92_p0 = scmp.eq.s32.totalorder %s91_s1, 0  ;;  %s1356_s9 = sadd.s32 1, %s951_s19 }
  0x40   : > { %s1163_s5 = scalar_select %p148_p12, %s939_s16, %s1355_s26  }
  0x41   : > { %s1168_s27 = scalar_select %p92_p0, %s951_s19, %s1356_s9  }
  0x42   : > { %s202_s23 = scalar_lea.sflag [#allocation5], %s201_s11  ;;  %p813_p1 = pneg %p1128_p7 }
  0x43   : > { %s824_s15 = scalar_lea.vmem %s1156_s28, 2048  ;;  %s982_s17 = smov [#allocation8]  }
  0x44   : > { %p825_p2 = scmp.ne.s32.totalorder %s1156_s28, %s824_s15  ;;  %s829_s29 = sshll.u32 %s982_s17, 4  ;;  %s830_s29 = int_to_ptr.vmem [resolvable:$false] %s829_s29 }
  0x45   : > { %s831_s6 = scalar_lea.vmem %s830_s29, 4096  ;;  %p832_p9 = scmp.lt.s32.totalorder %s1156_s28, %s830_s29 }
  0x46   : > { %p827_p5 = pnand %p825_p2, %p813_p1  ;;  %p833_p11 = scmp.lt.s32.totalorder %s831_s6, %s824_s15 }
  0x48   : > { %p828_p8 = pneg %p827_p5  ;;  %p834_p13 = por %p833_p11, %p832_p9 }
  0x4a   : > { %p835_p4 = pnand %p834_p13, %p828_p8 }
  0x4c   : > { %838 = shalt.err (!%p835_p4)
}
  0x4d   : > { %s983_s24 = smov 256   ;;  %s984_s8 = smov 128  }
  0x4e   : > { %s985_s11 = smov 8   ;;  %p1357_p6 = scmp.ne.s32.totalorder %s1351_s13, 0 }
  0x4f   : > { %670 = dma.hbm_to_vmem [thread:$0]  (!%p1128_p7), %s1154_s4, 2048, %s1156_s28, %s202_s23, %s983_s24, %s984_s8, %s985_s11  }
  0x50   : > { %238 = sbr.rel (%p1357_p6) target bundleno = 420 (0x1a4), region = 36 }
  0x55   : > { %918 = dma.done.wait (%p1085_p3), [#allocation7], 16  }
  0x56   : > { %920 = vsyncadd (%p1085_p3), [#allocation7], 4294967280  ;;  %s244_s12 = sand.u32 1, %s947_s18   ;;  %p1358_p10 = scmp.ne.s32.totalorder %s1345_s7, 0 }
  0x57   : > { %s594_s1 = sshll.u32 %s244_s12, 7  ;;  %s245_s26 = scalar_lea.sflag [#allocation5], %s244_s12 }
  0x58   : > { %s1186_s9 = scalar_lea.vmem [#allocation8], %s594_s1 }
  0x59   : > { %922 = dma.done.wait (%p1358_p10), %s245_s26, 2048  }
  0x5a   : > { %924 = vsyncadd (%p1358_p10), %s245_s26, 4294965248 }
  0x5b   : > { %253 = sfence }
  0x5c   : > { %s278_s4 = sand.u32 1, %s935_s0   ;;  %p281_p3 = scmp.lt.s32.totalorder %s963_s22, 1 }
  0x5d   : > { %p283_p7 = scmp.lt.s32.totalorder %s955_s20, 1  ;;  %s1205_s17 = scalar_lea.vmem [#allocation9], %s278_s4 }
  0x5e   : > { %s282_s30 = scalar_select %p281_p3, %s963_s22, 1 }
  0x5f   : > { %s284_s13 = scalar_select %p283_p7, %s955_s20, 1 }
  0x60   : > { %s595_s14 = sshll.u32 %s282_s30, 1  ;;  %p596_p12 = scmp.ne.s32.totalorder %s955_s20, 0 }
  0x61   : > { %s1197_s28 = sadd.s32 %s595_s14, %s284_s13 }
  0x62   : > { %s287_s7 = scalar_lea.vmem %s1321_s3, %s1197_s28  ;;  %291 = sbr.rel (%p596_p12) target bundleno = 105 (0x69), region = 48 }
  0x67   : > { %v986_v0 = vmov 0.0  }
  0x68   : > { %292 = vst [vmem:[#allocation2] sm:$0x1] %v986_v0 }
  0x69 PF: > { %v308_v1 = vld [vmem:[%s1186_s9 + $0x78] sm:$0xff]  ;;  %v307_v2 = vld [vmem:[%s1186_s9 + $0x70] sm:$0xff]  ;;  %v306_v3 = vld [vmem:[%s1186_s9 + $0x68] sm:$0xff]  ;;  %v987_v4 = vmov 0.0   ;;  %vm988_vm0 = vmmov 0   ;;  %p597_p0 = scmp.ne.s32.totalorder %s955_s20, 1 }
  0x6a   : > { %620 = vmatprep.subr.mxu0 %v987_v4  ;;  %v325_v5 = vmax.f32 %v308_v1, 1e-06  ;;  %v324_v6 = vmax.f32 %v307_v2, 1e-06  ;;  %v323_v7 = vmax.f32 %v306_v3, 1e-06  ;;  %652 = vmatprep.mubr.msk.f32.mxu0 %vm988_vm0, %v987_v4 }
  0x6b   : > { %v305_v8 = vld [vmem:[%s1186_s9 + $0x60] sm:$0xff]  ;;  %v304_v9 = vld [vmem:[%s1186_s9 + $0x58] sm:$0xff]  ;;  %v303_v10 = vld [vmem:[%s1186_s9 + $0x50] sm:$0xff]  ;;  %s437_s24 = sld [smem:[#allocation4 + %s963_s22]] (!%p597_p0) }
  0x6c   : > { %v341_v11 = vmul.f32 %v325_v5, %v325_v5  ;;  %v340_v12 = vmul.f32 %v324_v6, %v324_v6  ;;  %v339_v13 = vmul.f32 %v323_v7, %v323_v7  ;;  %v322_v14 = vmax.f32 %v305_v8, 1e-06  ;;  %v302_v16 = vld [vmem:[%s1186_s9 + $0x48] sm:$0xff]  ;;  %v301_v21 = vld [vmem:[%s1186_s9 + $0x40] sm:$0xff]  ;;  %v300_v25 = vld [vmem:[%s1186_s9 + $0x38] sm:$0xff] }
  0x6d   : > { %v321_v15 = vmax.f32 %v304_v9, 1e-06  ;;  %v320_v20 = vmax.f32 %v303_v10, 1e-06  ;;  %v319_v24 = vmax.f32 %v302_v16, 1e-06 }
  0x6e   : > { %v357_v17 = vmul.f32 %v341_v11, %v325_v5  ;;  %v356_v18 = vmul.f32 %v340_v12, %v324_v6  ;;  %v338_v19 = vmul.f32 %v322_v14, %v322_v14  ;;  %v355_v22 = vmul.f32 %v339_v13, %v323_v7  ;;  %v299_v29 = vld [vmem:[%s1186_s9 + $0x30] sm:$0xff]  ;;  %v298_v33 = vld [vmem:[%s1186_s9 + $0x28] sm:$0xff]  ;;  %v297_v37 = vld [vmem:[%s1186_s9 + $0x20] sm:$0xff] }
  0x6f   : > { %v337_v23 = vmul.f32 %v321_v15, %v321_v15  ;;  %v336_v27 = vmul.f32 %v320_v20, %v320_v20  ;;  %v318_v28 = vmax.f32 %v301_v21, 1e-06  ;;  %v335_v31 = vmul.f32 %v319_v24, %v319_v24  ;;  %v296_v41 = vld [vmem:[%s1186_s9 + $0x18] sm:$0xff]  ;;  %v295_v45 = vld [vmem:[%s1186_s9 + $0x10] sm:$0xff]  ;;  %v294_v49 = vld [vmem:[%s1186_s9 + $0x8] sm:$0xff] }
  0x70   : > { %621 = vmatpush3.msra.mxu0 %v357_v17  ;;  %v354_v26 = vmul.f32 %v338_v19, %v322_v14  ;;  %v317_v32 = vmax.f32 %v300_v25, 1e-06  ;;  %v316_v36 = vmax.f32 %v299_v29, 1e-06  ;;  %v315_v40 = vmax.f32 %v298_v33, 1e-06 }
  0x71   : > { %622 = vmatprep.subr.mxu0 %v987_v4  ;;  %v353_v30 = vmul.f32 %v337_v23, %v321_v15  ;;  %v352_v34 = vmul.f32 %v336_v27, %v320_v20  ;;  %v334_v35 = vmul.f32 %v318_v28, %v318_v28  ;;  %v351_v38 = vmul.f32 %v335_v31, %v319_v24  ;;  %v293_v53 = vld [vmem:[%s1186_s9] sm:$0xff]  ;;  %v309_v62 = vld [vmem:[%s287_s7] sm:$0x1] }
  0x72   : > { %623 = vmatpush3.msra.mxu0 %v356_v18  ;;  %v333_v39 = vmul.f32 %v317_v32, %v317_v32  ;;  %v332_v43 = vmul.f32 %v316_v36, %v316_v36  ;;  %v314_v44 = vmax.f32 %v297_v37, 1e-06  ;;  %v331_v47 = vmul.f32 %v315_v40, %v315_v40  ;;  %v360_v6 = vld [vmem:[#allocation2] sm:$0x1] }
  0x73   : > { %624 = vmatprep.subr.mxu0 %v987_v4  ;;  %v350_v42 = vmul.f32 %v334_v35, %v318_v28  ;;  %v313_v48 = vmax.f32 %v296_v41, 1e-06  ;;  %v312_v52 = vmax.f32 %v295_v45, 1e-06  ;;  %v311_v56 = vmax.f32 %v294_v49, 1e-06 }
  0x74   : > { %625 = vmatpush3.msra.mxu0 %v355_v22  ;;  %v349_v46 = vmul.f32 %v333_v39, %v317_v32  ;;  %v348_v50 = vmul.f32 %v332_v43, %v316_v36  ;;  %v330_v51 = vmul.f32 %v314_v44, %v314_v44  ;;  %v347_v54 = vmul.f32 %v331_v47, %v315_v40 }
  0x75   : > { %626 = vmatprep.subr.mxu0 %v987_v4  ;;  %v329_v55 = vmul.f32 %v313_v48, %v313_v48  ;;  %v328_v58 = vmul.f32 %v312_v52, %v312_v52  ;;  %v310_v59 = vmax.f32 %v293_v53, 1e-06  ;;  %v327_v61 = vmul.f32 %v311_v56, %v311_v56 }
  0x76   : > { %627 = vmatpush3.msra.mxu0 %v354_v26  ;;  %v346_v57 = vmul.f32 %v330_v51, %v314_v44  ;;  %v358_v1 = vmul.f32 %v309_v62, %v309_v62 }
  0x77   : > { %628 = vmatprep.subr.mxu0 %v987_v4  ;;  %v345_v60 = vmul.f32 %v329_v55, %v313_v48  ;;  %v344_v63 = vmul.f32 %v328_v58, %v312_v52  ;;  %v326_v0 = vmul.f32 %v310_v59, %v310_v59  ;;  %v343_v2 = vmul.f32 %v327_v61, %v311_v56 }
  0x78   : > { %629 = vmatpush3.msra.mxu0 %v353_v30  ;;  %v359_v5 = vmul.f32 %v358_v1, %v309_v62 }
  0x79   : > { %630 = vmatprep.subr.mxu0 %v987_v4  ;;  %v342_v3 = vmul.f32 %v326_v0, %v310_v59 }
  0x7a   : > { %631 = vmatpush3.msra.mxu0 %v352_v34 }
  0x7b   : > { %632 = vmatprep.subr.mxu0 %v987_v4 }
  0x7c   : > { %633 = vmatpush3.msra.mxu0 %v351_v38 }
  0x7d   : > { %634 = vmatprep.subr.mxu0 %v987_v4 }
  0x7e   : > { %635 = vmatpush3.msra.mxu0 %v350_v42 }
  0x7f   : > { %636 = vmatprep.subr.mxu0 %v987_v4 }
  0x80   : > { %637 = vmatpush3.msra.mxu0 %v349_v46 }
  0x81   : > { %638 = vmatprep.subr.mxu0 %v987_v4 }
  0x82   : > { %639 = vmatpush3.msra.mxu0 %v348_v50 }
  0x83   : > { %640 = vmatprep.subr.mxu0 %v987_v4 }
  0x84   : > { %641 = vmatpush3.msra.mxu0 %v347_v54 }
  0x85   : > { %642 = vmatprep.subr.mxu0 %v987_v4 }
  0x86   : > { %643 = vmatpush3.msra.mxu0 %v346_v57 }
  0x87   : > { %644 = vmatprep.subr.mxu0 %v987_v4 }
  0x88   : > { %645 = vmatpush3.msra.mxu0 %v345_v60 }
  0x89   : > { %646 = vmatprep.subr.mxu0 %v987_v4 }
  0x8a   : > { %647 = vmatpush3.msra.mxu0 %v344_v63 }
  0x8b   : > { %648 = vmatprep.subr.mxu0 %v987_v4 }
  0x8c   : > { %649 = vmatpush3.msra.mxu0 %v343_v2 }
  0x8d   : > { %650 = vmatprep.subr.mxu0 %v987_v4 }
  0x8e   : > { %651 = vmatpush3.msra.mxu0 %v342_v3 }
  0x8f   : > { %653 = vmatmul.mubr.f32.vlgmr.msra.gmra.mxu0 %v359_v5 }
 0x14e   : > { %436 = sbr.rel (%p597_p0) target bundleno = 394 (0x18a), region = 52 }
 0x14f   : > { %v427_v7 = vpop.f32.mrf.mxu0 }
 0x150   : > { %v431_v8 = vadd.f32 %v427_v7, %v360_v6 }
 0x151   : > { %v654_v9 = vpop.f32.mrf.mxu0 }
 0x152   : > { %432 = vst [vmem:[#allocation2] sm:$0x1] %v431_v8 }
 0x153   : > { %v439_v10 = vstv %s437_s24 }
 0x154   : > { %790 = vrcp.f32 %v439_v10 }
 0x159   : > { %v438_v11 = vld [vmem:[#allocation2] sm:$0x1] }
 0x161   : > { %v791_v12 = vpop.eup %790 }
 0x162   : > { %v441_v13 = vmul.f32 %v791_v12, %v438_v11 }
 0x164   : > { %vm442_vm1 = vcmp.gt.f32.partialorder %v441_v13, 0.0 }
 0x165   : > { %v443_v4 = vsel %vm442_vm1, %v441_v13, 1.0 }
 0x166   : > { %792 = vlog2.f32 %v443_v4 }
 0x173   : > { %v793_v14 = vpop.eup %792 }
 0x174   : > { %v445_v15 = vmul.f32 0.6931472, %v793_v14 }
 0x176   : > { %v446_v16 = vmul.f32 0.33333334, %v445_v15 }
 0x178   : > { %v447_v17 = vmul.f32 1.442695, %v446_v16 }
 0x17a   : > { %794 = vpow2.f32 %v447_v17 }
 0x187   : > { %v795_v18 = vpop.eup %794 }
 0x188   : > { %v449_v19 = vsel %vm442_vm1, %v795_v18, 0.0 }
 0x189   : > { %450 = vst [vmem:[%s1205_s17] sm:$0x1] %v449_v19 }
 0x18a PF: > { %s1359_s20 = sld [smem:[#allocation17_spill]]  ;;  %s598_s8 = sshll.u32 %s963_s22, 1 }
 0x18b   : > { %s462_s11 = sadd.s32 %s959_s21, %s598_s8  ;;  %s466_s12 = sshll.u32 %s1205_s17, 4  ;;  %s467_s12 = int_to_ptr.vmem [resolvable:$true] %s466_s12 }
 0x18c   : > { %s599_s1 = sshll.u32 %s462_s11, 4  ;;  %s1360_s30 = sld [smem:[#allocation22_spill]] }
 0x18d   : > { %s452_s14 = scalar_lea.sflag [#allocation6], %s278_s4  ;;  %s839_s28 = scalar_lea.vmem %s467_s12, 16 }
 0x18e   : > { %p840_p1 = scmp.ne.s32.totalorder %s467_s12, %s839_s28  ;;  %s989_s23 = smov [#allocation9]  }
 0x18f   : > { %s843_s15 = sshll.u32 %s989_s23, 4  ;;  %s844_s15 = int_to_ptr.vmem [resolvable:$false] %s843_s15 }
 0x190   : > { %p1361_p2 = scmp.ne.s32.totalorder %s1359_s20, 0  ;;  %s845_s7 = scalar_lea.vmem %s844_s15, 32 }
 0x191   : > { %p846_p9 = scmp.lt.s32.totalorder %s467_s12, %s844_s15  ;;  %p847_p11 = scmp.lt.s32.totalorder %s845_s7, %s839_s28 }
 0x192   : > { %s464_s13 = scalar_lea.hbm %s1360_s30, %s599_s1  ;;  %p841_p5 = pnand %p840_p1, %p1361_p2 }
 0x193   : > { %p848_p13 = por %p847_p11, %p846_p9 }
 0x194   : > { %p842_p8 = pneg %p841_p5 }
 0x196   : > { %p849_p4 = pnand %p848_p13, %p842_p8 }
 0x198   : > { %852 = shalt.err (!%p849_p4)
}
 0x199   : > { %s853_s21 = scalar_lea.hbm %s464_s13, 16  ;;  %s857_s17 = scalar_lea.hbm %s1360_s30, 64 }
 0x19a   : > { %p854_p6 = scmp.ne.s32.totalorder %s464_s13, %s853_s21  ;;  %p858_p7 = scmp.lt.s32.totalorder %s464_s13, %s1360_s30 }
 0x19b   : > { %p859_p12 = scmp.lt.s32.totalorder %s857_s17, %s853_s21 }
 0x19c   : > { %p855_p10 = pnand %p854_p6, %p1361_p2 }
 0x19d   : > { %p860_p0 = por %p859_p12, %p858_p7 }
 0x19e   : > { %p856_p3 = pneg %p855_p10 }
 0x1a0   : > { %p861_p1 = pnand %p860_p0, %p856_p3 }
 0x1a2   : > { %864 = shalt.err (!%p861_p1)
}
 0x1a3   : > { %661 = dma.vmem_to_hbm [thread:$0]  (%p1361_p2), %s467_s12, 16, %s464_s13, %s452_s14  }
 0x1a4 PF: > { %s1362_s24 = sld [smem:[#allocation16_spill]] }
 0x1a5   : > { %s1363_s8 = sld [smem:[#allocation13_spill]] }
 0x1a6   : > { %s1364_s11 = sld [smem:[#allocation18_spill]] }
 0x1aa   : > { %p678_p5 = scmp.ge.s32.totalorder %s1362_s24, 2 }
 0x1ab   : > { %s478_s1 = sand.u32 1, %s1363_s8  }
 0x1ac   : > { %p1365_p8 = scmp.ne.s32.totalorder %s1364_s11, 0  ;;  %s479_s26 = scalar_lea.sflag [#allocation6], %s478_s1 }
 0x1ae   : > { %p672_p9 = pnand %p678_p5, %p1365_p8 }
 0x1b0   : > { %p673_p11 = pneg %p672_p9 }
 0x1b2   : > { %926 = dma.done.wait (%p673_p11), %s479_s26, 16  }
 0x1b3   : > { %928 = vsyncadd (%p673_p11), %s479_s26, 4294967280  ;;  %s22_s26 = sadd.s32 1, %s1362_s24   ;;  %s1367_s20 = sld [smem:[#allocation14_spill]] }
 0x1b4   : > { %p1274_p13 = scmp.ge.s32.totalorder %s22_s26, 10   ;;  %s1368_s21 = sld [smem:[#allocation15_spill]] }
 0x1b5   : > { %s1369_s23 = sld [smem:[#allocation19_spill]]  ;;  %s1371_s15 = smov %s935_s0 }
 0x1b6   : > { %s1370_s24 = sld [smem:[#allocation20_spill]]  ;;  %s1372_s0 = smov %s939_s16 }
 0x1b7   : > { %s1373_s16 = smov %s1163_s5  ;;  %s1374_s17 = smov %s947_s18 }
 0x1b8   : > { %s1375_s18 = smov %s951_s19  ;;  %s1376_s19 = smov %s1168_s27 }
 0x1b9   : > { %s1377_s22 = smov %s975_s25  ;;  %s1378_s25 = smov %s1388_s10 }
 0x1ba   :  { %21 = sbr.rel (!%p1274_p13) target bundleno = 14 (0xe), region = 97 }
 0x1bf   :  { %483 = vsyncpa [#allocation5], 1 }
 0x1c0   :  { %485 = vsyncpa [#allocation5 + $0x1], 1 }
 0x1c1   :  { %486 = vsyncpa [#allocation6], 1 }
 0x1c2   :  { %488 = vsyncpa [#allocation6 + $0x1], 1 }
 0x1c3   :  { %489 = vsyncpa [#allocation7], 1 }
 0x1c4   :  { %491 = vsyncpa [#allocation7 + $0x1], 1 }

</bundles_post_ra>
